<compile_context>
chip_gen: v6e
topology: v6e:2x2x1
jax: 0.10.0
libtpu: 0.0.40
codegen_flags: <defaults>
</compile_context>

<pallas_src>
import math

import jax
import jax.numpy as jnp
from jax.experimental import pallas as pl
from jax.experimental.pallas import tpu as pltpu


def _round_up(a, b):
    return ((a + b - 1) // b) * b


def _lane_multiple():
    """K/N padding granularity: 256 on v6e/v7x (2x256^2 MXU), else 128."""
    try:
        kind = jax.devices()[0].device_kind.lower()
    except Exception:
        return 128
    return 256 if ("v6" in kind or "v7" in kind) else 128


def _pick_tile(dim, preferred):
    """Largest tile <= preferred that divides dim (dim is a multiple of 128)."""
    if dim <= preferred:
        return dim
    best = 128
    c = 128
    while c <= preferred:
        if dim % c == 0:
            best = c
        c += 128
    return best


def _vmem_limit(tile_bytes):
    # Generous headroom over the actual tile footprint (default tiles use only
    # a few MiB, so this stays far under v7x's 64 MiB physical VMEM); the cap
    # only matters for user-swept giant tiles on v5e/v6e (128 MiB physical).
    return int(min(max(2 * tile_bytes + (8 << 20), 32 << 20), 96 << 20))


# --------------------------- Stage 1: W_eff prep ---------------------------

def _nac_weight_kernel(wt_ref, ws_ref, w_ref):
    # Effective NAC weight tile: tanh * sigmoid in f32 (EUP), then an in-kernel
    # XLU transpose into the canonical (K, N) layout, cast to the MXU feed
    # dtype.  Zero padding of the raw weights is exact (tanh(0)*sigmoid(0)==0).
    wt = wt_ref[...].astype(jnp.float32)            # (bn, bk) = (out rows, in cols)
    ws = ws_ref[...].astype(jnp.float32)
    w = jnp.tanh(wt) * jax.nn.sigmoid(ws)
    w_ref[...] = w.T.astype(w_ref.dtype)            # (bk, bn)


def _nac_effective_weight(weight_tanh, weight_sigma, in_p, out_p, mxu_dtype, w_tile):
    out_f, in_f = weight_tanh.shape
    wt = weight_tanh.astype(jnp.float32)
    ws = weight_sigma.astype(jnp.float32)
    if (out_f, in_f) != (out_p, in_p):
        pad = ((0, out_p - out_f), (0, in_p - in_f))
        wt = jnp.pad(wt, pad)
        ws = jnp.pad(ws, pad)

    bn = _pick_tile(out_p, w_tile)      # raw rows  = output columns (N)
    bk = _pick_tile(in_p, w_tile)       # raw cols  = contraction dim (K)
    wb = jnp.dtype(mxu_dtype).itemsize

    tile_bytes = 2 * 2 * bn * bk * 4 + 2 * bk * bn * wb  # 2 f32 ins + out, dbl-buffered
    return pl.pallas_call(
        _nac_weight_kernel,
        out_shape=jax.ShapeDtypeStruct((in_p, out_p), mxu_dtype),
        grid_spec=pl.GridSpec(
            grid=(out_p // bn, in_p // bk),
            in_specs=[
                pl.BlockSpec((bn, bk), lambda j, k: (j, k)),
                pl.BlockSpec((bn, bk), lambda j, k: (j, k)),
            ],
            out_specs=pl.BlockSpec((bk, bn), lambda j, k: (k, j)),
        ),
        compiler_params=pltpu.CompilerParams(
            dimension_semantics=("parallel", "parallel"),
            vmem_limit_bytes=_vmem_limit(tile_bytes),
        ),
        cost_estimate=pl.CostEstimate(
            flops=int(in_p * out_p),
            transcendentals=int(2 * in_p * out_p),
            bytes_accessed=int(2 * out_p * in_p * 4 + in_p * out_p * wb),
        ),
    )(wt, ws)


# --------------------------- Stage 2: tiled matmul ---------------------------

def _nac_matmul_kernel(x_ref, w_ref, o_ref, acc_ref):
    # (tm, tk) x (tk, tn) MXU matmul, f32 VMEM accumulation over the K grid axis.
    @pl.when(pl.program_id(2) == 0)
    def _():
        acc_ref[...] = jnp.zeros_like(acc_ref)

    acc_ref[...] += jnp.dot(x_ref[...], w_ref[...],
                            preferred_element_type=jnp.float32)

    @pl.when(pl.program_id(2) == pl.num_programs(2) - 1)
    def _():
        o_ref[...] = acc_ref[...].astype(o_ref.dtype)


def nac_forward(x, weight_tanh, weight_sigma, *,
                mxu_dtype=jnp.bfloat16, out_dtype=jnp.float32,
                tile_m=256, tile_n=256, tile_k=512, w_tile=512):
    """NAC forward: y = x @ (tanh(Wt) * sigmoid(Ws)).T

    x:            (..., in_features)
    weight_tanh:  (out_features, in_features)
    weight_sigma: (out_features, in_features)
    returns:      (..., out_features) in `out_dtype`
    """
    in_f = x.shape[-1]
    out_f, in_f_w = weight_tanh.shape
    assert in_f == in_f_w, "in_features mismatch"
    assert weight_sigma.shape == weight_tanh.shape

    lane = _lane_multiple()
    in_p = _round_up(in_f, lane)
    out_p = _round_up(out_f, lane)

    # -------- Stage 1: effective weight, computed once per forward --------
    w_eff = _nac_effective_weight(weight_tanh, weight_sigma, in_p, out_p,
                                  mxu_dtype, w_tile)

    # -------- Stage 2: (M, N, K)-tiled matmul --------
    lead_shape = x.shape[:-1]
    x2 = x.reshape(-1, in_f)
    n = x2.shape[0]

    tm = min(_round_up(max(tile_m, 16), 16), _round_up(n, 16))  # bf16 sublane tile
    n_p = _round_up(n, tm)
    tk = _pick_tile(in_p, tile_k)
    tn = _pick_tile(out_p, tile_n)

    x_p = x2.astype(mxu_dtype)                 # cast straight to MXU feed dtype
    if (n_p, in_p) != (n, in_f):
        x_p = jnp.pad(x_p, ((0, n_p - n), (0, in_p - in_f)))

    xb = jnp.dtype(mxu_dtype).itemsize
    wb = jnp.dtype(mxu_dtype).itemsize
    ob = jnp.dtype(out_dtype).itemsize
    tile_bytes = (2 * tm * tk * xb + 2 * tk * tn * wb
                  + 2 * tm * tn * ob + tm * tn * 4)

    grid = (n_p // tm, out_p // tn, in_p // tk)
    y_p = pl.pallas_call(
        _nac_matmul_kernel,
        out_shape=jax.ShapeDtypeStruct((n_p, out_p), out_dtype),
        grid_spec=pltpu.PrefetchScalarGridSpec(
            num_scalar_prefetch=0,
            grid=grid,
            in_specs=[
                pl.BlockSpec((tm, tk), lambda i, j, k: (i, k)),   # x tile
                pl.BlockSpec((tk, tn), lambda i, j, k: (k, j)),   # W_eff tile
            ],
            out_specs=pl.BlockSpec((tm, tn), lambda i, j, k: (i, j)),
            scratch_shapes=[pltpu.VMEM((tm, tn), jnp.float32)],
        ),
        compiler_params=pltpu.CompilerParams(
            dimension_semantics=("parallel", "parallel", "arbitrary"),
            vmem_limit_bytes=_vmem_limit(tile_bytes),
        ),
        cost_estimate=pl.CostEstimate(
            flops=int(2 * n_p * in_p * out_p),
            transcendentals=0,
            bytes_accessed=int(grid[1] * n_p * in_p * xb
                               + grid[0] * in_p * out_p * wb
                               + n_p * out_p * ob),
        ),
    )(x_p, w_eff)

    y = y_p[:n, :out_f]
    return y.reshape(lead_shape + (out_f,))


if __name__ == "__main__":
    in_features = 32
    out_features = 16
    batch = 8

    key = jax.random.PRNGKey(0)
    k_x, k_x3, k_wt, k_ws = jax.random.split(key, 4)

    # Deterministic init mirroring NAC.reset_parameters:
    # uniform(-stdv, stdv) with stdv = 1/sqrt(out_features).
    stdv = 1.0 / math.sqrt(out_features)
    weight_tanh = jax.random.uniform(k_wt, (out_features, in_features),
                                     jnp.float32, minval=-stdv, maxval=stdv)
    weight_sigma = jax.random.uniform(k_ws, (out_features, in_features),
                                      jnp.float32, minval=-stdv, maxval=stdv)

    def nac_reference(xv):
        w = jnp.tanh(weight_tanh) * jax.nn.sigmoid(weight_sigma)
        return jnp.einsum("...k,ok->...o", xv.astype(jnp.float32), w)

    # 2-D input (N, in_features), default bf16 MXU feed.
    x = jax.random.normal(k_x, (batch, in_features), jnp.float32)
    y = jax.block_until_ready(nac_forward(x, weight_tanh, weight_sigma))
    assert y.shape == (batch, out_features)
    assert jnp.allclose(y, nac_reference(x), atol=3e-2, rtol=3e-2), "2D bf16 mismatch"

    # (N, *, in_features) input with extra leading dims (PyTorch shape spec).
    x3 = jax.random.normal(k_x3, (2, 4, in_features), jnp.float32)
    y3 = jax.block_until_ready(nac_forward(x3, weight_tanh, weight_sigma))
    assert y3.shape == (2, 4, out_features)
    assert jnp.allclose(y3, nac_reference(x3), atol=3e-2, rtol=3e-2), "3D bf16 mismatch"

    # Full-precision MXU path for parity-sensitive uses.
    y32 = jax.block_until_ready(
        nac_forward(x, weight_tanh, weight_sigma, mxu_dtype=jnp.float32))
    assert jnp.allclose(y32, nac_reference(x), atol=1e-3, rtol=1e-3), "f32 mismatch"

    print("KERNEL_OK")
</pallas_src>

<mosaic_0001>
module attributes {stable_mosaic.version = 11 : i64} {
  func.func @_nac_weight_kernel(%arg0: i32, %arg1: i32, %arg2: memref<128x128xf32, #tpu.memory_space<vmem>>, %arg3: memref<128x128xf32, #tpu.memory_space<vmem>>, %arg4: memref<128x128xbf16, #tpu.memory_space<vmem>>) attributes {dimension_semantics = [#tpu.dimension_semantics<parallel>, #tpu.dimension_semantics<parallel>], iteration_bounds = array<i64: 1, 1>, scalar_prefetch = 0 : i64, scratch_operands = 0 : i64, tpu.core_type = #tpu.core_type<tc>, window_params = [{transform_indices = @transform_0, window_bounds = array<i64: 128, 128>}, {transform_indices = @transform_1, window_bounds = array<i64: 128, 128>}, {transform_indices = @transform_2, window_bounds = array<i64: 128, 128>}]} {
    %c0 = arith.constant 0 : index
    %c0_0 = arith.constant 0 : index
    %0 = vector.load %arg2[%c0, %c0_0] : memref<128x128xf32, #tpu.memory_space<vmem>>, vector<128x128xf32>
    %c0_1 = arith.constant 0 : index
    %c0_2 = arith.constant 0 : index
    %1 = vector.load %arg3[%c0_1, %c0_2] : memref<128x128xf32, #tpu.memory_space<vmem>>, vector<128x128xf32>
    %2 = math.tanh %0 : vector<128x128xf32>
    %3 = arith.negf %1 : vector<128x128xf32>
    %4 = math.exp %3 : vector<128x128xf32>
    %cst = arith.constant 1.000000e+00 : f32
    %5 = vector.broadcast %cst : f32 to vector<128x128xf32>
    %6 = arith.addf %5, %4 : vector<128x128xf32>
    %7 = arith.divf %5, %6 : vector<128x128xf32>
    %8 = arith.mulf %2, %7 : vector<128x128xf32>
    %9 = tpu.transpose %8, [1, 0] : vector<128x128xf32> -> vector<128x128xf32>
    %10 = arith.truncf %9 : vector<128x128xf32> to vector<128x128xbf16>
    %c0_3 = arith.constant 0 : index
    %c0_4 = arith.constant 0 : index
    %11 = vector.load %arg4[%c0_3, %c0_4] : memref<128x128xbf16, #tpu.memory_space<vmem>>, vector<128x128xbf16>
    tpu.vector_store %arg4[%c0_3, %c0_4], %10 {strides = array<i32>} : memref<128x128xbf16, #tpu.memory_space<vmem>>, vector<128x128xbf16>,
    return
  }
  func.func @transform_0(%arg0: i32, %arg1: i32) -> (i32, i32) {
    %c0_i32 = arith.constant 0 : i32
    return %arg0, %arg1 : i32, i32
  }
  func.func @transform_1(%arg0: i32, %arg1: i32) -> (i32, i32) {
    %c0_i32 = arith.constant 0 : i32
    return %arg0, %arg1 : i32, i32
  }
  func.func @transform_2(%arg0: i32, %arg1: i32) -> (i32, i32) {
    %c0_i32 = arith.constant 0 : i32
    return %arg1, %arg0 : i32, i32
  }
}

</mosaic_0001>

<bundles_post_ra>
// kernel: tpu_custom_call.1
= control target key start
LH: loop header
LB: loop body
LE: loop exit
PB: predicated region body
PF: predicated region fallthrough
CT: control target
= control target key end

     0   :  { %7 = vsyncpa [#allocation3], 0  ;;  %s625_s0 = inlined_call_operand.hbm [shape: f32[128,128], index: 0, kind: input, shape index: {}]   ;;  %s626_s1 = inlined_call_operand.hbm [shape: f32[128,128], index: 1, kind: input, shape index: {}]   ;;  %s627_s2 = inlined_call_operand.hbm [shape: bf16[128,128], index: 2, kind: output, shape index: {}]  }
   0x1   :  { %8 = vsyncpa [#allocation6], 0 }
   0x2   :  { %9 = vsyncpa [#allocation4], 0  ;;  %s594_s9 = smov [#allocation2]  }
   0x3   :  { %s15_s10 = sshll.u32 %s594_s9, 4  ;;  %s16_s10 = int_to_ptr.vmem [resolvable:$true] %s15_s10 }
   0x4   :  { %s536_s11 = scalar_lea.vmem %s16_s10, 2048  ;;  %p541_p1 = scmp.lt.s32.totalorder %s16_s10, %s16_s10 }
   0x5   :  { %p537_p0 = scmp.ne.s32.totalorder %s16_s10, %s536_s11  ;;  %p542_p2 = scmp.lt.s32.totalorder %s536_s11, %s536_s11 }
   0x7   :  { %p543_p3 = por %p542_p2, %p541_p1 }
   0x9   :  { %p544_p4 = pnand %p543_p3, %p537_p0 }
   0xb   :  { %547 = shalt.err (!%p544_p4)
}
   0xc   :  { %s595_s12 = smov 128   ;;  %s596_s13 = smov 8  }
   0xd   :  { %21 = dma.hbm_to_vmem [thread:$0]  %s625_s0, 2048, %s16_s10, [#allocation3], %s595_s12, %s595_s12, %s596_s13  }
   0xe   :  { %s597_s16 = smov [#allocation5]  }
   0xf   :  { %s27_s17 = sshll.u32 %s597_s16, 4  ;;  %s28_s17 = int_to_ptr.vmem [resolvable:$true] %s27_s17 }
  0x10   :  { %s556_s18 = scalar_lea.vmem %s28_s17, 2048  ;;  %p561_p6 = scmp.lt.s32.totalorder %s28_s17, %s28_s17 }
  0x11   :  { %p557_p5 = scmp.ne.s32.totalorder %s28_s17, %s556_s18  ;;  %p562_p7 = scmp.lt.s32.totalorder %s556_s18, %s556_s18 }
  0x13   :  { %p563_p8 = por %p562_p7, %p561_p6 }
  0x15   :  { %p564_p9 = pnand %p563_p8, %p557_p5 }
  0x17   :  { %567 = shalt.err (!%p564_p9)
}
  0x18   :  { %33 = dma.hbm_to_vmem [thread:$0]  %s626_s1, 2048, %s28_s17, [#allocation6], %s595_s12, %s595_s12, %s596_s13  }
  0x19   :  { %588 = dma.done.wait [#allocation3], 2048  }
  0x1a   :  { %589 = vsyncadd [#allocation3], 4294965248 }
  0x1b   :  { %590 = dma.done.wait [#allocation6], 2048  }
  0x1c   :  { %591 = vsyncadd [#allocation6], 4294965248  ;;  %v56_v0 = vld [vmem:[#allocation5] sm:$0xff]  ;;  %v57_v2 = vld [vmem:[#allocation5 + $0x8] sm:$0xff]  ;;  %s598_s0 = smov [#allocation7]  }
  0x1d   :  { %v330_v1 = vmul.f32 -1.442695, %v56_v0  ;;  %v58_v3 = vld [vmem:[#allocation5 + $0x10] sm:$0xff]  ;;  %v331_v4 = vmul.f32 -1.442695, %v57_v2  ;;  %v59_v6 = vld [vmem:[#allocation5 + $0x18] sm:$0xff] }
  0x1e   :  { %v332_v5 = vmul.f32 -1.442695, %v58_v3  ;;  %v333_v7 = vmul.f32 -1.442695, %v59_v6  ;;  %v60_v8 = vld [vmem:[#allocation5 + $0x20] sm:$0xff]  ;;  %v61_v10 = vld [vmem:[#allocation5 + $0x28] sm:$0xff] }
  0x1f   :  { %432 = vpow2.f32 %v330_v1  ;;  %v334_v9 = vmul.f32 -1.442695, %v60_v8  ;;  %v335_v11 = vmul.f32 -1.442695, %v61_v10  ;;  %v62_v12 = vld [vmem:[#allocation5 + $0x30] sm:$0xff]  ;;  %v40_v13 = vld [vmem:[#allocation2] sm:$0xff] }
  0x20   :  { %434 = vpow2.f32 %v331_v4  ;;  %v41_v14 = vld [vmem:[#allocation2 + $0x8] sm:$0xff]  ;;  %v336_v15 = vmul.f32 -1.442695, %v62_v12  ;;  %v63_v16 = vld [vmem:[#allocation5 + $0x38] sm:$0xff]  ;;  %v42_v21 = vld [vmem:[#allocation2 + $0x10] sm:$0xff]  ;;  %s317_s1 = sshll.u32 %s598_s0, 4  ;;  %s318_s1 = int_to_ptr.vmem [resolvable:$true] %s317_s1 }
  0x21   :  { %436 = vpow2.f32 %v332_v5  ;;  %v337_v22 = vmul.f32 -1.442695, %v63_v16  ;;  %v64_v24 = vld [vmem:[#allocation5 + $0x40] sm:$0xff]  ;;  %v43_v27 = vld [vmem:[#allocation2 + $0x18] sm:$0xff]  ;;  %v65_v30 = vld [vmem:[#allocation5 + $0x48] sm:$0xff]  ;;  %s568_s21 = scalar_lea.vmem %s318_s1, 1024  ;;  %p573_p11 = scmp.lt.s32.totalorder %s318_s1, %s318_s1 }
  0x22   :  { %438 = vpow2.f32 %v333_v7  ;;  %v338_v28 = vmul.f32 -1.442695, %v64_v24  ;;  %v44_v32 = vld [vmem:[#allocation2 + $0x20] sm:$0xff]  ;;  %v339_v33 = vmul.f32 -1.442695, %v65_v30  ;;  %v66_v35 = vld [vmem:[#allocation5 + $0x50] sm:$0xff]  ;;  %p569_p10 = scmp.ne.s32.totalorder %s318_s1, %s568_s21  ;;  %p574_p12 = scmp.lt.s32.totalorder %s568_s21, %s568_s21 }
  0x23   :  { %440 = vpow2.f32 %v334_v9  ;;  %v45_v39 = vld [vmem:[#allocation2 + $0x28] sm:$0xff]  ;;  %v340_v40 = vmul.f32 -1.442695, %v66_v35  ;;  %v67_v44 = vld [vmem:[#allocation5 + $0x58] sm:$0xff]  ;;  %v46_v48 = vld [vmem:[#allocation2 + $0x30] sm:$0xff] }
  0x24   :  { %442 = vpow2.f32 %v335_v11  ;;  %v341_v52 = vmul.f32 -1.442695, %v67_v44  ;;  %v68_v54 = vld [vmem:[#allocation5 + $0x60] sm:$0xff]  ;;  %v47_v56 = vld [vmem:[#allocation2 + $0x38] sm:$0xff]  ;;  %v69_v62 = vld [vmem:[#allocation5 + $0x68] sm:$0xff]  ;;  %p575_p13 = por %p574_p12, %p573_p11 }
  0x25   :  { %444 = vtanh.f32 %v40_v13  ;;  %v342_v60 = vmul.f32 -1.442695, %v68_v54  ;;  %v48_v0 = vld [vmem:[#allocation2 + $0x40] sm:$0xff]  ;;  %v343_v4 = vmul.f32 -1.442695, %v69_v62  ;;  %v70_v6 = vld [vmem:[#allocation5 + $0x70] sm:$0xff] }
  0x26   :  { %446 = vtanh.f32 %v41_v14  ;;  %v49_v8 = vld [vmem:[#allocation2 + $0x48] sm:$0xff]  ;;  %v344_v12 = vmul.f32 -1.442695, %v70_v6  ;;  %v71_v13 = vld [vmem:[#allocation5 + $0x78] sm:$0xff]  ;;  %v50_v16 = vld [vmem:[#allocation2 + $0x50] sm:$0xff]  ;;  %p576_p0 = pnand %p575_p13, %p569_p10 }
  0x27   :  { %448 = vpow2.f32 %v336_v15 }
  0x2c   :  { %v433_v17 = vpop.eup %432 }
  0x2d   :  { %v435_v18 = vpop.eup %434  ;;  %v136_v19 = vadd.f32 1.0, %v433_v17  ;;  %v345_v17 = vmul.f32 -1.442695, %v71_v13 }
  0x2e   :  { %v137_v20 = vadd.f32 1.0, %v435_v18  ;;  %v437_v23 = vpop.eup %436 }
  0x2f   :  { %450 = vrcp.f32 %v136_v19  ;;  %v138_v25 = vadd.f32 1.0, %v437_v23  ;;  %v439_v26 = vpop.eup %438 }
  0x30   :  { %452 = vrcp.f32 %v137_v20  ;;  %v139_v29 = vadd.f32 1.0, %v439_v26  ;;  %v441_v31 = vpop.eup %440 }
  0x31   :  { %454 = vtanh.f32 %v42_v21  ;;  %v140_v34 = vadd.f32 1.0, %v441_v31  ;;  %v443_v36 = vpop.eup %442  ;;  %v52_v31 = vld [vmem:[#allocation2 + $0x60] sm:$0xff] }
  0x32   :  { %456 = vpow2.f32 %v337_v22  ;;  %v445_v37 = vpop.eup %444  ;;  %v141_v42 = vadd.f32 1.0, %v443_v36 }
  0x33   :  { %458 = vrcp.f32 %v138_v25  ;;  %v447_v38 = vpop.eup %446  ;;  %v51_v25 = vld [vmem:[#allocation2 + $0x58] sm:$0xff] }
  0x34   :  { %460 = vtanh.f32 %v43_v27  ;;  %v449_v41 = vpop.eup %448 }
  0x35   :  { %462 = vpow2.f32 %v338_v28  ;;  %v142_v49 = vadd.f32 1.0, %v449_v41 }
  0x36   :  { %464 = vrcp.f32 %v139_v29 }
  0x37   :  { %466 = vtanh.f32 %v44_v32 }
  0x38   :  { %468 = vpow2.f32 %v339_v33 }
  0x39   :  { %470 = vrcp.f32 %v140_v34 }
  0x3a   :  { %472 = vtanh.f32 %v45_v39 }
  0x3b   :  { %474 = vpow2.f32 %v340_v40 }
  0x3c   :  { %v451_v43 = vpop.eup %450  ;;  %476 = vrcp.f32 %v141_v42 }
  0x3d   :  { %v453_v45 = vpop.eup %452  ;;  %v184_v46 = vmul.f32 %v451_v43, %v445_v37  ;;  %478 = vtanh.f32 %v46_v48  ;;  %v53_v37 = vld [vmem:[#allocation2 + $0x68] sm:$0xff]  ;;  %v54_v43 = vld [vmem:[#allocation2 + $0x70] sm:$0xff]  ;;  %v55_v48 = vld [vmem:[#allocation2 + $0x78] sm:$0xff] }
  0x3e   :  { %v455_v47 = vpop.eup %454  ;;  %v185_v51 = vmul.f32 %v453_v45, %v447_v38  ;;  %480 = vrcp.f32 %v142_v49 }
  0x3f   :  { %v457_v50 = vpop.eup %456  ;;  %200 = vxpose.xlu0.b32.start [1/16] %v184_v46, 128  ;;  %482 = vpow2.f32 %v341_v52 }
  0x40   :  { %v459_v53 = vpop.eup %458  ;;  %v143_v57 = vadd.f32 1.0, %v457_v50  ;;  %484 = vtanh.f32 %v47_v56 }
  0x41   :  { %v461_v55 = vpop.eup %460  ;;  %v186_v59 = vmul.f32 %v459_v53, %v455_v47 }
  0x42   :  { %v463_v58 = vpop.eup %462  ;;  %486 = vrcp.f32 %v143_v57 }
  0x43   :  { %201 = vxpose.xlu0.b32.cont [2/16] %v185_v51, 128  ;;  %v465_v61 = vpop.eup %464  ;;  %v144_v1 = vadd.f32 1.0, %v463_v58  ;;  %488 = vpow2.f32 %v342_v60 }
  0x44   :  { %v467_v63 = vpop.eup %466  ;;  %v187_v3 = vmul.f32 %v465_v61, %v461_v55  ;;  %490 = vtanh.f32 %v48_v0 }
  0x45   :  { %v469_v2 = vpop.eup %468  ;;  %492 = vrcp.f32 %v144_v1 }
  0x46   :  { %v471_v5 = vpop.eup %470  ;;  %v145_v9 = vadd.f32 1.0, %v469_v2  ;;  %494 = vpow2.f32 %v343_v4 }
  0x47   :  { %202 = vxpose.xlu0.b32.cont [3/16] %v186_v59, 128  ;;  %v473_v7 = vpop.eup %472  ;;  %v188_v11 = vmul.f32 %v471_v5, %v467_v63  ;;  %496 = vtanh.f32 %v49_v8 }
  0x48   :  { %v475_v10 = vpop.eup %474  ;;  %498 = vrcp.f32 %v145_v9 }
  0x49   :  { %v477_v14 = vpop.eup %476  ;;  %v146_v20 = vadd.f32 1.0, %v475_v10  ;;  %500 = vpow2.f32 %v344_v12 }
  0x4a   :  { %v479_v15 = vpop.eup %478  ;;  %v189_v19 = vmul.f32 %v477_v14, %v473_v7  ;;  %502 = vtanh.f32 %v50_v16 }
  0x4b   :  { %203 = vxpose.xlu0.b32.cont [4/16] %v187_v3, 128  ;;  %v481_v18 = vpop.eup %480  ;;  %504 = vpow2.f32 %v345_v17 }
  0x4c   :  { %v483_v21 = vpop.eup %482  ;;  %v190_v24 = vmul.f32 %v481_v18, %v479_v15  ;;  %506 = vrcp.f32 %v146_v20 }
  0x4d   :  { %v485_v22 = vpop.eup %484  ;;  %v147_v26 = vadd.f32 1.0, %v483_v21  ;;  %508 = vtanh.f32 %v51_v25 }
  0x4f   :  { %204 = vxpose.xlu0.b32.cont [5/16] %v188_v11, 128  ;;  %v487_v23 = vpop.eup %486  ;;  %510 = vrcp.f32 %v147_v26 }
  0x50   :  { %v489_v27 = vpop.eup %488  ;;  %v191_v30 = vmul.f32 %v487_v23, %v485_v22  ;;  %512 = vtanh.f32 %v52_v31 }
  0x51   :  { %v491_v28 = vpop.eup %490  ;;  %v148_v32 = vadd.f32 1.0, %v489_v27 }
  0x52   :  { %v493_v29 = vpop.eup %492 }
  0x53   :  { %205 = vxpose.xlu0.b32.cont [6/16] %v189_v19, 128  ;;  %v495_v33 = vpop.eup %494  ;;  %v192_v36 = vmul.f32 %v493_v29, %v491_v28  ;;  %514 = vrcp.f32 %v148_v32 }
  0x54   :  { %v497_v34 = vpop.eup %496  ;;  %v149_v38 = vadd.f32 1.0, %v495_v33  ;;  %516 = vtanh.f32 %v53_v37 }
  0x55   :  { %v499_v35 = vpop.eup %498 }
  0x56   :  { %v501_v39 = vpop.eup %500  ;;  %v193_v42 = vmul.f32 %v499_v35, %v497_v34  ;;  %518 = vrcp.f32 %v149_v38 }
  0x57   :  { %206 = vxpose.xlu0.b32.cont [7/16] %v190_v24, 128  ;;  %v503_v40 = vpop.eup %502  ;;  %v150_v44 = vadd.f32 1.0, %v501_v39  ;;  %520 = vtanh.f32 %v54_v43 }
  0x58   :  { %v505_v41 = vpop.eup %504 }
  0x59   :  { %v507_v45 = vpop.eup %506  ;;  %522 = vrcp.f32 %v150_v44  ;;  %v151_v49 = vadd.f32 1.0, %v505_v41 }
  0x5a   :  { %v509_v46 = vpop.eup %508  ;;  %v194_v47 = vmul.f32 %v507_v45, %v503_v40  ;;  %524 = vtanh.f32 %v55_v48 }
  0x5b   :  { %207 = vxpose.xlu0.b32.cont [8/16] %v191_v30, 128  ;;  %526 = vrcp.f32 %v151_v49 }
  0x5c   :  { %v511_v50 = vpop.eup %510 }
  0x5d   :  { %v513_v51 = vpop.eup %512  ;;  %v195_v52 = vmul.f32 %v511_v50, %v509_v46 }
  0x5f   :  { %208 = vxpose.xlu0.b32.cont [9/16] %v192_v36, 128 }
  0x60   :  { %v515_v53 = vpop.eup %514 }
  0x61   :  { %v517_v54 = vpop.eup %516  ;;  %v196_v55 = vmul.f32 %v515_v53, %v513_v51 }
  0x63   :  { %209 = vxpose.xlu0.b32.cont [10/16] %v193_v42, 128  ;;  %v519_v56 = vpop.eup %518 }
  0x64   :  { %v521_v57 = vpop.eup %520  ;;  %v197_v58 = vmul.f32 %v519_v56, %v517_v54 }
  0x66   :  { %v523_v59 = vpop.eup %522 }
  0x67   :  { %210 = vxpose.xlu0.b32.cont [11/16] %v194_v47, 128  ;;  %v525_v60 = vpop.eup %524  ;;  %v198_v61 = vmul.f32 %v523_v59, %v521_v57 }
  0x68   :  { %v527_v62 = vpop.eup %526 }
  0x69   :  { %v199_v63 = vmul.f32 %v527_v62, %v525_v60 }
  0x6b   :  { %211 = vxpose.xlu0.b32.cont [12/16] %v195_v52, 128 }
  0x6f   :  { %212 = vxpose.xlu0.b32.cont [13/16] %v196_v55, 128 }
  0x73   :  { %213 = vxpose.xlu0.b32.cont [14/16] %v197_v58, 128 }
  0x77   :  { %214 = vxpose.xlu0.b32.cont [15/16] %v198_v61, 128 }
  0x7b   :  { %215 = vxpose.xlu0.b32.end [16/16] %v199_v63, 128 }
  0xbb   :  { %v216_v0 = vpop.trf.xlu0 }
  0xbf   :  { %v217_v1 = vpop.trf.xlu0 }
  0xc0   :  { %v381_v2 = vpack.c.bf16 %v217_v1, %v216_v0 }
  0xc2   :  { %382 = vst [vmem:[#allocation7] sm:$0xff] %v381_v2  }
  0xc3   :  { %v218_v3 = vpop.trf.xlu0 }
  0xc7   :  { %v219_v4 = vpop.trf.xlu0 }
  0xc8   :  { %v386_v5 = vpack.c.bf16 %v219_v4, %v218_v3 }
  0xca   :  { %418 = vst [vmem:[#allocation7 + $0x8] sm:$0xff] %v386_v5  }
  0xcb   :  { %v220_v6 = vpop.trf.xlu0 }
  0xcf   :  { %v221_v7 = vpop.trf.xlu0 }
  0xd0   :  { %v391_v8 = vpack.c.bf16 %v221_v7, %v220_v6 }
  0xd2   :  { %419 = vst [vmem:[#allocation7 + $0x10] sm:$0xff] %v391_v8  }
  0xd3   :  { %v222_v9 = vpop.trf.xlu0 }
  0xd7   :  { %v223_v10 = vpop.trf.xlu0 }
  0xd8   :  { %v396_v11 = vpack.c.bf16 %v223_v10, %v222_v9 }
  0xda   :  { %420 = vst [vmem:[#allocation7 + $0x18] sm:$0xff] %v396_v11  }
  0xdb   :  { %v224_v12 = vpop.trf.xlu0 }
  0xdf   :  { %v225_v13 = vpop.trf.xlu0 }
  0xe0   :  { %v401_v14 = vpack.c.bf16 %v225_v13, %v224_v12 }
  0xe2   :  { %421 = vst [vmem:[#allocation7 + $0x20] sm:$0xff] %v401_v14  }
  0xe3   :  { %v226_v15 = vpop.trf.xlu0 }
  0xe7   :  { %v227_v16 = vpop.trf.xlu0 }
  0xe8   :  { %v406_v17 = vpack.c.bf16 %v227_v16, %v226_v15 }
  0xea   :  { %422 = vst [vmem:[#allocation7 + $0x28] sm:$0xff] %v406_v17  }
  0xeb   :  { %v228_v18 = vpop.trf.xlu0 }
  0xef   :  { %v229_v19 = vpop.trf.xlu0 }
  0xf0   :  { %v411_v20 = vpack.c.bf16 %v229_v19, %v228_v18 }
  0xf2   :  { %423 = vst [vmem:[#allocation7 + $0x30] sm:$0xff] %v411_v20  }
  0xf3   :  { %v230_v21 = vpop.trf.xlu0 }
  0xf7   :  { %v231_v22 = vpop.trf.xlu0 }
  0xf8   :  { %v416_v23 = vpack.c.bf16 %v231_v22, %v230_v21 }
  0xfa   :  { %424 = vst [vmem:[#allocation7 + $0x38] sm:$0xff] %v416_v23  }
  0xfb   :  { %579 = shalt.err (!%p576_p0)
}
  0xfc   :  { %s599_s22 = smov 64   ;;  %s600_s23 = smov 4  }
  0xfd   :  { %323 = dma.vmem_to_hbm [thread:$0]  %s318_s1, 1024, %s627_s2, [#allocation4], %s599_s22, %s599_s22, %s600_s23  }
  0xfe   :  { %592 = dma.done.wait [#allocation4], 1024  }
  0xff   :  { %593 = vsyncadd [#allocation4], 4294966272 }
 0x100   :  { %327 = vsyncpa [#allocation3], 1 }
 0x101   :  { %328 = vsyncpa [#allocation6], 1 }
 0x102   :  { %329 = vsyncpa [#allocation4], 1 }

</bundles_post_ra>
